<compile_context>
chip_gen: v6e
topology: v6e:2x2x1
jax: 0.10.0
libtpu: 0.0.40
codegen_flags: <defaults>
</compile_context>

<pallas_src>
import jax
import jax.numpy as jnp
from jax.experimental import pallas as pl
from jax.experimental.pallas import tpu as pltpu


def _round_up(x, m):
    return ((x + m - 1) // m) * m


# ---------------------------------------------------------------------------
# One-time parameter packing (run at parameter-load time, NOT per forward call)
# ---------------------------------------------------------------------------
def pack_gru_params(params, input_size, hidden_size, matmul_dtype=jnp.bfloat16):
    """Pack per-layer (wih_t, whh_t, bih, bhh) into lane-dense stacked arrays.

    params[i] = (wih_t (in_i, 3H), whh_t (H, 3H), bih (1, 3H), bhh (1, 3H)),
    torch.nn.GRUCell gate order [r, z, n] (weights already transposed).
    """
    H = hidden_size
    Hp = _round_up(H, 128)

    def relay(w_t, rows):  # re-lay [r|z|n] columns onto Hp-wide (128-lane) blocks
        out = jnp.zeros((rows, 3 * Hp), jnp.float32)
        for g in range(3):
            out = out.at[:w_t.shape[0], g * Hp:g * Hp + H].set(
                w_t[:, g * H:(g + 1) * H])
        return out

    wih0_p = relay(params[0][0], input_size)          # layer-0 input projection (f32)
    wih_l, whh_l, bx_l, bhn_l = [], [], [], []
    for li, (wih_t, whh_t, bih, bhh) in enumerate(params):
        whh_l.append(relay(whh_t, Hp))
        if li >= 1:                                   # layers >= 1 keep K = Hp
            wih_l.append(relay(wih_t, Hp))
        # r,z biases pre-summed (b_ih + b_hh); n keeps only b_ih here.
        bx = jnp.zeros((1, 3 * Hp), jnp.float32)
        bx = bx.at[:, 0 * Hp:0 * Hp + H].set(bih[:, 0 * H:1 * H] + bhh[:, 0 * H:1 * H])
        bx = bx.at[:, 1 * Hp:1 * Hp + H].set(bih[:, 1 * H:2 * H] + bhh[:, 1 * H:2 * H])
        bx = bx.at[:, 2 * Hp:2 * Hp + H].set(bih[:, 2 * H:3 * H])
        bx_l.append(bx)
        bhn_l.append(jnp.zeros((1, Hp), jnp.float32).at[:, :H].set(
            bhh[:, 2 * H:3 * H]))
    if not wih_l:                                     # num_layers == 1: dummy block
        wih_l.append(jnp.zeros((Hp, 3 * Hp), jnp.float32))

    return {
        "wih0": wih0_p,                               # (in, 3Hp)       f32 (XLA)
        "wih": jnp.stack(wih_l).astype(matmul_dtype),  # (max(L-1,1), Hp, 3Hp)
        "whh": jnp.stack(whh_l).astype(matmul_dtype),  # (L, Hp, 3Hp)
        "bx": jnp.stack(bx_l),                        # (L, 1, 3Hp)     f32
        "bhn": jnp.stack(bhn_l),                      # (L, 1, Hp)      f32
    }


# ---------------------------------------------------------------------------
# Kernel: one grid step == one GRU layer
# ---------------------------------------------------------------------------
def _stacked_gru_kernel(gx0_ref, h0_ref, wih_ref, whh_ref, bx_ref, bhn_ref,
                        hn_ref, xs_ref, gx_ref):
    layer = pl.program_id(0)
    Hp = bhn_ref.shape[-1]
    mdt = whh_ref.dtype                               # matmul (streaming) dtype

    h = h0_ref[0].astype(jnp.float32)                 # (Bp, Hp)
    gh = jnp.dot(h0_ref[0].astype(mdt), whh_ref[0],
                 preferred_element_type=jnp.float32)  # (Bp, 3Hp) f32 accumulation

    @pl.when(layer == 0)
    def _():                                          # precomputed x @ W_ih0
        gx_ref[...] = gx0_ref[...]

    @pl.when(layer > 0)
    def _():                                          # previous layer's output in VMEM
        gx_ref[...] = jnp.dot(xs_ref[...].astype(mdt), wih_ref[0],
                              preferred_element_type=jnp.float32)

    gx = gx_ref[...] + bx_ref[0]                      # (Bp, 3Hp), lane-aligned gates
    r = jax.nn.sigmoid(gx[:, 0 * Hp:1 * Hp] + gh[:, 0 * Hp:1 * Hp])
    z = jax.nn.sigmoid(gx[:, 1 * Hp:2 * Hp] + gh[:, 1 * Hp:2 * Hp])
    n = jnp.tanh(gx[:, 2 * Hp:3 * Hp] + r * (gh[:, 2 * Hp:3 * Hp] + bhn_ref[0]))
    h_new = n + z * (h - n)                           # == (1-z)*n + z*h, 1 fewer op

    hn_ref[0] = h_new.astype(hn_ref.dtype)

    @pl.when(layer + 1 < pl.num_programs(0))
    def _():                                          # carry to next layer (VMEM)
        xs_ref[...] = h_new


# ---------------------------------------------------------------------------
# Forward wrapper (jit-able; takes pre-packed params)
# ---------------------------------------------------------------------------
def stacking_gru_cell_forward(x, h0, packed):
    """x: (batch, input_size); h0: (num_layers, batch, hidden).
    packed: output of pack_gru_params. Returns (output, hn)."""
    batch, _ = x.shape
    num_layers, _, hidden = h0.shape
    Hp = packed["whh"].shape[1]
    Bp = _round_up(batch, 8)
    itemsize = jnp.dtype(packed["whh"].dtype).itemsize

    # Layer-0 input projection as a tiny plain-XLA matmul, already in the
    # Hp-block gate layout -> stacked W_ih keeps K = Hp for layers >= 1.
    gx0 = jnp.dot(x.astype(jnp.float32), packed["wih0"])
    gx0_pad = jnp.zeros((Bp, 3 * Hp), jnp.float32).at[:batch].set(gx0)
    h0_pad = jnp.zeros((num_layers, Bp, Hp), jnp.float32).at[
        :, :batch, :hidden].set(h0.astype(jnp.float32))

    # ---- explicit VMEM budget: weights dominate; single-buffer if 2x won't fit
    w_layer_bytes = 2 * Hp * 3 * Hp * itemsize            # W_ih + W_hh per layer
    act_bytes = (2 * (Bp * Hp) + 2 * (Bp * 3 * Hp)) * 4 * 2 \
        + (Bp * Hp + Bp * 3 * Hp) * 4                      # blocks + scratches
    budget = 40 * 1024 * 1024                              # headroom on v7x 64 MiB
    n_wbuf = 2 if (2 * w_layer_bytes + act_bytes) <= budget else 1
    # TODO(synk): for Hp where even single-buffered weights exceed VMEM, tile the
    # 3*Hp gate dimension with a second grid axis (and/or split columns across
    # the two v7x TensorCores).
    w_kwargs = {} if n_wbuf == 2 else {"pipeline_mode": pl.Buffered(1)}
    vmem_limit = min(max(int(1.5 * (n_wbuf * w_layer_bytes + act_bytes)),
                         32 * 1024 * 1024), 100 * 1024 * 1024)

    hn_pad = pl.pallas_call(
        _stacked_gru_kernel,
        out_shape=jax.ShapeDtypeStruct((num_layers, Bp, Hp), jnp.float32),
        grid_spec=pltpu.PrefetchScalarGridSpec(
            num_scalar_prefetch=0,
            grid=(num_layers,),
            in_specs=[
                pl.BlockSpec((Bp, 3 * Hp), lambda l: (0, 0)),            # gx0
                pl.BlockSpec((1, Bp, Hp), lambda l: (l, 0, 0)),          # h0[l]
                pl.BlockSpec((1, Hp, 3 * Hp),
                             lambda l: (jnp.maximum(l - 1, 0), 0, 0),
                             **w_kwargs),                                # W_ih (l>=1)
                pl.BlockSpec((1, Hp, 3 * Hp), lambda l: (l, 0, 0),
                             **w_kwargs),                                # W_hh
                pl.BlockSpec((1, 1, 3 * Hp), lambda l: (l, 0, 0)),       # biases r,z,n(x)
                pl.BlockSpec((1, 1, Hp), lambda l: (l, 0, 0)),           # b_hh (n gate)
            ],
            out_specs=pl.BlockSpec((1, Bp, Hp), lambda l: (l, 0, 0)),
            scratch_shapes=[
                pltpu.VMEM((Bp, Hp), jnp.float32),       # carried layer input
                pltpu.VMEM((Bp, 3 * Hp), jnp.float32),   # gate-x pre-activations
            ],
        ),
        compiler_params=pltpu.CompilerParams(
            dimension_semantics=("arbitrary",),          # layers are sequential
            vmem_limit_bytes=vmem_limit),
    )(gx0_pad, h0_pad, packed["wih"], packed["whh"], packed["bx"], packed["bhn"])

    hn = hn_pad[:, :batch, :hidden].astype(x.dtype)
    output = hn[-1]
    return output, hn


# ---------------------------------------------------------------------------
# Test harness
# ---------------------------------------------------------------------------
def init_params(key, input_size, hidden_size, num_layers):
    """Deterministic PyTorch-style init: U(-1/sqrt(H), 1/sqrt(H))."""
    params = []
    bound = 1.0 / (hidden_size ** 0.5)
    in_sizes = [input_size] + [hidden_size] * (num_layers - 1)
    for layer_in in in_sizes:
        key, k1, k2, k3, k4 = jax.random.split(key, 5)
        wih_t = jax.random.uniform(k1, (layer_in, 3 * hidden_size),
                                   minval=-bound, maxval=bound, dtype=jnp.float32)
        whh_t = jax.random.uniform(k2, (hidden_size, 3 * hidden_size),
                                   minval=-bound, maxval=bound, dtype=jnp.float32)
        bih = jax.random.uniform(k3, (1, 3 * hidden_size),
                                 minval=-bound, maxval=bound, dtype=jnp.float32)
        bhh = jax.random.uniform(k4, (1, 3 * hidden_size),
                                 minval=-bound, maxval=bound, dtype=jnp.float32)
        params.append((wih_t, whh_t, bih, bhh))
    return params


def _reference_forward(x, h0, params):
    """Pure-JAX reference for correctness checking (matches the PyTorch module)."""
    hn = []
    out = x
    for i, (wih_t, whh_t, bih, bhh) in enumerate(params):
        h = h0[i]
        H = h.shape[-1]
        gx = out @ wih_t + bih
        gh = h @ whh_t + bhh
        r = jax.nn.sigmoid(gx[:, :H] + gh[:, :H])
        z = jax.nn.sigmoid(gx[:, H:2 * H] + gh[:, H:2 * H])
        n = jnp.tanh(gx[:, 2 * H:] + r * gh[:, 2 * H:])
        out = (1.0 - z) * n + z * h
        hn.append(out)
    return out, jnp.stack(hn)


if __name__ == "__main__":
    batch, input_size, hidden_size, num_layers = 4, 16, 32, 2

    key = jax.random.PRNGKey(0)
    k_x, k_h, k_p = jax.random.split(key, 3)
    x = jax.random.normal(k_x, (batch, input_size), dtype=jnp.float32)
    h0 = jax.random.normal(k_h, (num_layers, batch, hidden_size), dtype=jnp.float32)
    params = init_params(k_p, input_size, hidden_size, num_layers)

    fwd = jax.jit(stacking_gru_cell_forward)

    # Exact-parity path (f32 weights).
    packed_f32 = pack_gru_params(params, input_size, hidden_size,
                                 matmul_dtype=jnp.float32)
    out_f32, hn_f32 = jax.block_until_ready(fwd(x, h0, packed_f32))

    # Default fast path (bf16 weight streaming, f32 accumulation / gate math).
    packed_bf16 = pack_gru_params(params, input_size, hidden_size,
                                  matmul_dtype=jnp.bfloat16)
    out_bf16, hn_bf16 = jax.block_until_ready(fwd(x, h0, packed_bf16))

    ref_out, ref_hn = _reference_forward(x, h0, params)
    assert out_f32.shape == (batch, hidden_size)
    assert hn_f32.shape == (num_layers, batch, hidden_size)
    assert jnp.allclose(out_f32, ref_out, atol=1e-5, rtol=1e-5)
    assert jnp.allclose(hn_f32, ref_hn, atol=1e-5, rtol=1e-5)
    assert jnp.allclose(out_bf16, ref_out, atol=2e-2, rtol=2e-2)
    assert jnp.allclose(hn_bf16, ref_hn, atol=2e-2, rtol=2e-2)

    print("KERNEL_OK")
</pallas_src>

<mosaic_0001>
module attributes {stable_mosaic.version = 11 : i64} {
  func.func @_stacked_gru_kernel(%arg0: i32, %arg1: memref<8x384xf32, #tpu.memory_space<vmem>>, %arg2: memref<1x8x128xf32, #tpu.memory_space<vmem>>, %arg3: memref<1x128x384xf32, #tpu.memory_space<vmem>>, %arg4: memref<1x128x384xf32, #tpu.memory_space<vmem>>, %arg5: memref<1x1x384xf32, #tpu.memory_space<vmem>>, %arg6: memref<1x1x128xf32, #tpu.memory_space<vmem>>, %arg7: memref<1x8x128xf32, #tpu.memory_space<vmem>>, %arg8: memref<8x128xf32, #tpu.memory_space<vmem>>, %arg9: memref<8x384xf32, #tpu.memory_space<vmem>>) attributes {dimension_semantics = [#tpu.dimension_semantics<arbitrary>], iteration_bounds = array<i64: 2>, scalar_prefetch = 0 : i64, scratch_operands = 2 : i64, tpu.core_type = #tpu.core_type<tc>, window_params = [{pipeline_mode = #tpu.pipeline_mode<synchronous>, transform_indices = @transform_0, window_bounds = array<i64: 8, 384>}, {transform_indices = @transform_1, window_bounds = array<i64: 1, 8, 128>}, {transform_indices = @transform_2, window_bounds = array<i64: 1, 128, 384>}, {transform_indices = @transform_3, window_bounds = array<i64: 1, 128, 384>}, {transform_indices = @transform_4, window_bounds = array<i64: 1, 1, 384>}, {transform_indices = @transform_5, window_bounds = array<i64: 1, 1, 128>}, {transform_indices = @transform_6, window_bounds = array<i64: 1, 8, 128>}]} {
    %c0 = arith.constant 0 : index
    %c0_0 = arith.constant 0 : index
    %c0_1 = arith.constant 0 : index
    %0 = vector.load %arg2[%c0, %c0_0, %c0_1] : memref<1x8x128xf32, #tpu.memory_space<vmem>>, vector<1x8x128xf32>
    %1 = vector.shape_cast %0 : vector<1x8x128xf32> to vector<8x128xf32>
    %c0_2 = arith.constant 0 : index
    %c0_3 = arith.constant 0 : index
    %c0_4 = arith.constant 0 : index
    %2 = vector.load %arg2[%c0_2, %c0_3, %c0_4] : memref<1x8x128xf32, #tpu.memory_space<vmem>>, vector<1x8x128xf32>
    %3 = vector.shape_cast %2 : vector<1x8x128xf32> to vector<8x128xf32>
    %c0_5 = arith.constant 0 : index
    %c0_6 = arith.constant 0 : index
    %c0_7 = arith.constant 0 : index
    %4 = vector.load %arg4[%c0_5, %c0_6, %c0_7] : memref<1x128x384xf32, #tpu.memory_space<vmem>>, vector<1x128x384xf32>
    %5 = vector.shape_cast %4 : vector<1x128x384xf32> to vector<128x384xf32>
    %cst = arith.constant dense<0.000000e+00> : vector<8x384xf32>
    %6 = tpu.matmul %3, %5, %cst {dimension_numbers = #tpu.dot_dimension_numbers<[1], [0], [0], [1], [0, 0, 1, 1], [], []>} : vector<8x128xf32>, vector<128x384xf32>, vector<8x384xf32> -> vector<8x384xf32>
    %c0_i32 = arith.constant 0 : i32
    %7 = arith.cmpi eq, %arg0, %c0_i32 : i32
    %8 = arith.extui %7 : i1 to i32
    %c0_i32_8 = arith.constant 0 : i32
    %9 = arith.cmpi ne, %8, %c0_i32_8 : i32
    scf.if %9 {
      %c0_25 = arith.constant 0 : index
      %c0_26 = arith.constant 0 : index
      %53 = vector.load %arg1[%c0_25, %c0_26] : memref<8x384xf32, #tpu.memory_space<vmem>>, vector<8x384xf32>
      %c0_27 = arith.constant 0 : index
      %c0_28 = arith.constant 0 : index
      %54 = vector.load %arg9[%c0_27, %c0_28] : memref<8x384xf32, #tpu.memory_space<vmem>>, vector<8x384xf32>
      tpu.vector_store %arg9[%c0_27, %c0_28], %53 {strides = array<i32>} : memref<8x384xf32, #tpu.memory_space<vmem>>, vector<8x384xf32>,
    } else {
    }
    %c0_i32_9 = arith.constant 0 : i32
    %10 = arith.cmpi sgt, %arg0, %c0_i32_9 : i32
    %11 = arith.extui %10 : i1 to i32
    %c0_i32_10 = arith.constant 0 : i32
    %12 = arith.cmpi ne, %11, %c0_i32_10 : i32
    scf.if %12 {
      %c0_25 = arith.constant 0 : index
      %c0_26 = arith.constant 0 : index
      %53 = vector.load %arg8[%c0_25, %c0_26] : memref<8x128xf32, #tpu.memory_space<vmem>>, vector<8x128xf32>
      %c0_27 = arith.constant 0 : index
      %c0_28 = arith.constant 0 : index
      %c0_29 = arith.constant 0 : index
      %54 = vector.load %arg3[%c0_27, %c0_28, %c0_29] : memref<1x128x384xf32, #tpu.memory_space<vmem>>, vector<1x128x384xf32>
      %55 = vector.shape_cast %54 : vector<1x128x384xf32> to vector<128x384xf32>
      %cst_30 = arith.constant dense<0.000000e+00> : vector<8x384xf32>
      %56 = tpu.matmul %53, %55, %cst_30 {dimension_numbers = #tpu.dot_dimension_numbers<[1], [0], [0], [1], [0, 0, 1, 1], [], []>} : vector<8x128xf32>, vector<128x384xf32>, vector<8x384xf32> -> vector<8x384xf32>
      %c0_31 = arith.constant 0 : index
      %c0_32 = arith.constant 0 : index
      %57 = vector.load %arg9[%c0_31, %c0_32] : memref<8x384xf32, #tpu.memory_space<vmem>>, vector<8x384xf32>
      tpu.vector_store %arg9[%c0_31, %c0_32], %56 {strides = array<i32>} : memref<8x384xf32, #tpu.memory_space<vmem>>, vector<8x384xf32>,
    } else {
    }
    %c0_11 = arith.constant 0 : index
    %c0_12 = arith.constant 0 : index
    %13 = vector.load %arg9[%c0_11, %c0_12] : memref<8x384xf32, #tpu.memory_space<vmem>>, vector<8x384xf32>
    %c0_13 = arith.constant 0 : index
    %c0_14 = arith.constant 0 : index
    %c0_15 = arith.constant 0 : index
    %14 = vector.load %arg5[%c0_13, %c0_14, %c0_15] : memref<1x1x384xf32, #tpu.memory_space<vmem>>, vector<1x1x384xf32>
    %15 = vector.shape_cast %14 : vector<1x1x384xf32> to vector<1x384xf32>
    %16 = vector.broadcast %15 : vector<1x384xf32> to vector<8x384xf32>
    %17 = arith.addf %13, %16 : vector<8x384xf32>
    %18 = vector.extract_strided_slice %17 {offsets = [0, 0], sizes = [8, 128], strides = [1, 1]} : vector<8x384xf32> to vector<8x128xf32>
    %19 = vector.extract_strided_slice %6 {offsets = [0, 0], sizes = [8, 128], strides = [1, 1]} : vector<8x384xf32> to vector<8x128xf32>
    %20 = arith.addf %18, %19 : vector<8x128xf32>
    %21 = arith.negf %20 : vector<8x128xf32>
    %22 = math.exp %21 : vector<8x128xf32>
    %cst_16 = arith.constant 1.000000e+00 : f32
    %23 = vector.broadcast %cst_16 : f32 to vector<8x128xf32>
    %24 = arith.addf %23, %22 : vector<8x128xf32>
    %25 = arith.divf %23, %24 : vector<8x128xf32>
    %26 = vector.extract_strided_slice %17 {offsets = [0, 128], sizes = [8, 128], strides = [1, 1]} : vector<8x384xf32> to vector<8x128xf32>
    %27 = vector.extract_strided_slice %6 {offsets = [0, 128], sizes = [8, 128], strides = [1, 1]} : vector<8x384xf32> to vector<8x128xf32>
    %28 = arith.addf %26, %27 : vector<8x128xf32>
    %29 = arith.negf %28 : vector<8x128xf32>
    %30 = math.exp %29 : vector<8x128xf32>
    %cst_17 = arith.constant 1.000000e+00 : f32
    %31 = vector.broadcast %cst_17 : f32 to vector<8x128xf32>
    %32 = arith.addf %31, %30 : vector<8x128xf32>
    %33 = arith.divf %31, %32 : vector<8x128xf32>
    %34 = vector.extract_strided_slice %17 {offsets = [0, 256], sizes = [8, 128], strides = [1, 1]} : vector<8x384xf32> to vector<8x128xf32>
    %35 = vector.extract_strided_slice %6 {offsets = [0, 256], sizes = [8, 128], strides = [1, 1]} : vector<8x384xf32> to vector<8x128xf32>
    %c0_18 = arith.constant 0 : index
    %c0_19 = arith.constant 0 : index
    %c0_20 = arith.constant 0 : index
    %36 = vector.load %arg6[%c0_18, %c0_19, %c0_20] : memref<1x1x128xf32, #tpu.memory_space<vmem>>, vector<1x1x128xf32>
    %37 = vector.shape_cast %36 : vector<1x1x128xf32> to vector<1x128xf32>
    %38 = vector.broadcast %37 : vector<1x128xf32> to vector<8x128xf32>
    %39 = arith.addf %35, %38 : vector<8x128xf32>
    %40 = arith.mulf %25, %39 : vector<8x128xf32>
    %41 = arith.addf %34, %40 : vector<8x128xf32>
    %42 = math.tanh %41 : vector<8x128xf32>
    %43 = arith.subf %1, %42 : vector<8x128xf32>
    %44 = arith.mulf %33, %43 : vector<8x128xf32>
    %45 = arith.addf %42, %44 : vector<8x128xf32>
    %c0_21 = arith.constant 0 : index
    %c0_22 = arith.constant 0 : index
    %c0_23 = arith.constant 0 : index
    %46 = vector.load %arg7[%c0_21, %c0_22, %c0_23] : memref<1x8x128xf32, #tpu.memory_space<vmem>>, vector<1x8x128xf32>
    %47 = vector.shape_cast %46 : vector<1x8x128xf32> to vector<8x128xf32>
    %48 = vector.shape_cast %45 : vector<8x128xf32> to vector<1x8x128xf32>
    tpu.vector_store %arg7[%c0_21, %c0_22, %c0_23], %48 {strides = array<i32>} : memref<1x8x128xf32, #tpu.memory_space<vmem>>, vector<1x8x128xf32>,
    %c1_i32 = arith.constant 1 : i32
    %49 = arith.addi %arg0, %c1_i32 : i32
    %c2_i32 = arith.constant 2 : i32
    %50 = arith.cmpi slt, %49, %c2_i32 : i32
    %51 = arith.extui %50 : i1 to i32
    %c0_i32_24 = arith.constant 0 : i32
    %52 = arith.cmpi ne, %51, %c0_i32_24 : i32
    scf.if %52 {
      %c0_25 = arith.constant 0 : index
      %c0_26 = arith.constant 0 : index
      %53 = vector.load %arg8[%c0_25, %c0_26] : memref<8x128xf32, #tpu.memory_space<vmem>>, vector<8x128xf32>
      tpu.vector_store %arg8[%c0_25, %c0_26], %45 {strides = array<i32>} : memref<8x128xf32, #tpu.memory_space<vmem>>, vector<8x128xf32>,
    } else {
    }
    return
  }
  func.func @transform_0(%arg0: i32) -> (i32, i32) {
    %c0_i32 = arith.constant 0 : i32
    %c0_i32_0 = arith.constant 0 : i32
    %c0_i32_1 = arith.constant 0 : i32
    return %c0_i32, %c0_i32_0 : i32, i32
  }
  func.func @transform_1(%arg0: i32) -> (i32, i32, i32) {
    %c0_i32 = arith.constant 0 : i32
    %c0_i32_0 = arith.constant 0 : i32
    %c0_i32_1 = arith.constant 0 : i32
    return %arg0, %c0_i32, %c0_i32_0 : i32, i32, i32
  }
  func.func @transform_2(%arg0: i32) -> (i32, i32, i32) {
    %c1_i32 = arith.constant 1 : i32
    %0 = arith.subi %arg0, %c1_i32 : i32
    %c0_i32 = arith.constant 0 : i32
    %1 = arith.maxsi %0, %c0_i32 : i32
    %c0_i32_0 = arith.constant 0 : i32
    %c0_i32_1 = arith.constant 0 : i32
    %c0_i32_2 = arith.constant 0 : i32
    return %1, %c0_i32_0, %c0_i32_1 : i32, i32, i32
  }
  func.func @transform_3(%arg0: i32) -> (i32, i32, i32) {
    %c0_i32 = arith.constant 0 : i32
    %c0_i32_0 = arith.constant 0 : i32
    %c0_i32_1 = arith.constant 0 : i32
    return %arg0, %c0_i32, %c0_i32_0 : i32, i32, i32
  }
  func.func @transform_4(%arg0: i32) -> (i32, i32, i32) {
    %c0_i32 = arith.constant 0 : i32
    %c0_i32_0 = arith.constant 0 : i32
    %c0_i32_1 = arith.constant 0 : i32
    return %arg0, %c0_i32, %c0_i32_0 : i32, i32, i32
  }
  func.func @transform_5(%arg0: i32) -> (i32, i32, i32) {
    %c0_i32 = arith.constant 0 : i32
    %c0_i32_0 = arith.constant 0 : i32
    %c0_i32_1 = arith.constant 0 : i32
    return %arg0, %c0_i32, %c0_i32_0 : i32, i32, i32
  }
  func.func @transform_6(%arg0: i32) -> (i32, i32, i32) {
    %c0_i32 = arith.constant 0 : i32
    %c0_i32_0 = arith.constant 0 : i32
    %c0_i32_1 = arith.constant 0 : i32
    return %arg0, %c0_i32, %c0_i32_0 : i32, i32, i32
  }
}

</mosaic_0001>

<bundles_post_ra>
// kernel: stacking_gru_cell_forward.1
= control target key start
LH: loop header
LB: loop body
LE: loop exit
PB: predicated region body
PF: predicated region fallthrough
CT: control target
= control target key end

     0   :  { %11 = vsyncpa [#allocation5], 0  ;;  %s1715_s0 = inlined_call_operand.vmem [shape: f32[8,384], index: 0, kind: input, shape index: {}]   ;;  %s1716_s1 = inlined_call_operand.vmem [shape: f32[2,8,128], index: 1, kind: input, shape index: {}]   ;;  %s1717_s2 = inlined_call_operand.hbm [shape: f32[1,128,384], index: 2, kind: input, shape index: {}]   ;;  %s1718_s3 = inlined_call_operand.hbm [shape: f32[2,128,384], index: 3, kind: input, shape index: {}]   ;;  %s1719_s4 = inlined_call_operand.vmem [shape: f32[2,1,384], index: 4, kind: input, shape index: {}]   ;;  %s1720_s5 = inlined_call_operand.vmem [shape: f32[2,1,128], index: 5, kind: input, shape index: {}]   ;;  %s1721_s6 = inlined_call_operand.vmem [shape: f32[2,8,128], index: 6, kind: output, shape index: {}]  }
   0x1   :  { %13 = vsyncpa [#allocation5 + $0x1], 0 }
   0x2   :  { %14 = vsyncpa [#allocation7], 0 }
   0x3   :  { %16 = vsyncpa [#allocation7 + $0x1], 0  ;;  %s1323_s21 = smov 0   ;;  %s1325_s22 = smov 0  }
   0x4   :  { %s1327_s23 = smov 0   ;;  %s1329_s24 = smov 0  }
   0x5   :  { %s1331_s25 = smov 0   ;;  %s1333_s26 = smov 0  }
   0x6   :  { %s1335_s27 = smov 0  }
   0x7 LB: > { %s1355_s28 = sadd.s32 4294967295, %s1278_s27   ;;  %s1358_s29 = sadd.s32 1, %s1278_s27   ;;  %s1278_s27 = sphi %s1335_s27, %s1748_s27   ;;  %s1274_s26 = sphi %s1333_s26, %s1747_s26   ;;  %s1270_s25 = sphi %s1331_s25, %s1746_s25   ;;  %s1266_s24 = sphi %s1329_s24, %s1745_s24   ;;  %s1262_s23 = sphi %s1327_s23, %s1744_s23   ;;  %s1258_s22 = sphi %s1325_s22, %s1743_s22   ;;  %s1254_s21 = sphi %s1323_s21, %s1742_s21  }
   0x8   : > { %p74_p0 = scmp.gt.s32.totalorder %s1355_s28, 0  ;;  %s948_s30 = sadd.s32 4294967295, %s1358_s29 }
   0x9   : > { %p77_p1 = scmp.gt.s32.totalorder %s948_s30, 0  ;;  %s82_s7 = sadd.s32 1, %s1274_s26 }
   0xa   : > { %s75_s8 = scalar_select %p74_p0, %s1355_s28, 0 }
   0xb   : > { %s1750_s30 = smov (!%p77_p1, %s948_s30), 0  ;;  %p89_p2 = scmp.ne.s32.totalorder %s1274_s26, %s1270_s25 }
   0xc   : > { %p1723_p3 = scmp.eq.s32.totalorder %s1278_s27, 0  ;;  %s79_s9 = ssub.s32 %s75_s8, %s1750_s30 }
   0xd   : > { %p95_p4 = scmp.ne.s32.totalorder %s1270_s25, %s1266_s24  ;;  %p80_p5 = scmp.eq.s32.totalorder %s79_s9, 0 }
   0xe   : > { %p91_p6 = por %p1723_p3, %p89_p2  ;;  %p96_p7 = scmp.eq.s32.totalorder %s1355_s28, 0 }
   0xf   : > { %s105_s10 = ssub.s32 %s1278_s27, %s1358_s29  ;;  %p121_p10 = scmp.ne.s32.totalorder %s1258_s22, %s1254_s21 }
  0x10   : > { %s1374_s11 = scalar_select %p80_p5, %s1274_s26, %s82_s7  }
  0x11   : > { %p1376_p8 = por %p96_p7, %p95_p4  ;;  %p1380_p9 = scmp.eq.s32.totalorder %s105_s10, 0 }
  0x12   : > { %p1722_p11 = scmp.lt.s32.totalorder %s1278_s27, 2  ;;  %s233_s14 = sand.u32 1, %s1274_s26  }
  0x13   : > { %s1728_s12 = scalar_select %p1376_p8, 1, 0 }
  0x14   : > { %s1729_s13 = scalar_select %p1380_p9, 1, 0 }
  0x15   : > { %p1387_p12 = por %p121_p10, %p96_p7  ;;  %s1069_s16 = smul.u32 384, %s233_s14 }
  0x16   : > { %p1393_p13 = pnand %p1722_p11, %p91_p6  ;;  %s1070_s18 = smul.u32 6144, %s75_s8 }
  0x17   : > { %s1730_s15 = scalar_select %p1387_p12, 1, 0 }
  0x18   : > { %s1400_s24 = scalar_lea.hbm %s1717_s2, %s1070_s18  ;;  %s237_s21 = scalar_lea.vmem [#allocation4], %s1069_s16 }
  0x19   : > { %s247_s30 = sshll.u32 %s237_s21, 4  ;;  %s1404_s7 = scalar_lea.sflag [#allocation5], %s233_s14  ;;  %s1402_s30 = int_to_ptr.vmem [resolvable:$true] %s247_s30 }
  0x1a   : > { %s1160_s9 = scalar_lea.hbm %s1400_s24, 6144  ;;  %p1162_p1 = pneg %p1393_p13 }
  0x1b   : > { %p1161_p0 = scmp.ne.s32.totalorder %s1400_s24, %s1160_s9  ;;  %s1165_s18 = scalar_lea.hbm %s1717_s2, 6144 }
  0x1c   : > { %p1166_p5 = scmp.lt.s32.totalorder %s1400_s24, %s1717_s2  ;;  %p1167_p6 = scmp.lt.s32.totalorder %s1165_s18, %s1160_s9 }
  0x1d   : > { %p1163_p2 = pnand %p1162_p1, %p1161_p0 }
  0x1e   : > { %p1168_p7 = por %p1167_p6, %p1166_p5 }
  0x1f   : > { %p1164_p4 = pneg %p1163_p2 }
  0x21   : > { %p1169_p10 = pnand %p1168_p7, %p1164_p4 }
  0x23   : > { %1172 = shalt.err (!%p1169_p10)
}
  0x24   : > { %s1173_s14 = scalar_lea.vmem %s1402_s30, 6144  ;;  %s1280_s16 = smov [#allocation4]  }
  0x25   : > { %p1174_p11 = scmp.ne.s32.totalorder %s1402_s30, %s1173_s14  ;;  %s1178_s21 = sshll.u32 %s1280_s16, 4  ;;  %s1179_s21 = int_to_ptr.vmem [resolvable:$false] %s1178_s21 }
  0x26   : > { %s1180_s8 = scalar_lea.vmem %s1179_s21, 12288  ;;  %p1181_p2 = scmp.lt.s32.totalorder %s1402_s30, %s1179_s21 }
  0x27   : > { %p1176_p3 = pnand %p1174_p11, %p1162_p1  ;;  %p1182_p12 = scmp.lt.s32.totalorder %s1180_s8, %s1173_s14 }
  0x29   : > { %p1177_p0 = pneg %p1176_p3  ;;  %p1183_p8 = por %p1182_p12, %p1181_p2 }
  0x2b   : > { %p1184_p9 = pnand %p1183_p8, %p1177_p0 }
  0x2d   : > { %1187 = shalt.err (!%p1184_p9)
}
  0x2e   : > { %s1726_s9 = smov 384   ;;  %s1727_s10 = smov 24  }
  0x2f   : > { %1083 = dma.hbm_to_vmem [thread:$0]  (!%p1393_p13), %s1400_s24, 6144, %s1402_s30, %s1404_s7, %s1726_s9, %s1726_s9, %s1727_s10  }
  0x30   : > { %p954_p3 = scmp.ge.s32.totalorder %s1278_s27, 1  ;;  %p289_p8 = scmp.lt.s32.totalorder %s1278_s27, 3 }
  0x31   : > { %s1072_s18 = smul.u32 6144, %s1278_s27  ;;  %s108_s20 = sadd.s32 1, %s1262_s23 }
  0x32   : > { %p1431_p9 = pnand %p954_p3, %p289_p8  ;;  %p115_p11 = scmp.ne.s32.totalorder %s1262_s23, %s1258_s22 }
  0x33   : > { %p1733_p12 = scmp.ne.s32.totalorder %s1729_s13, 0  ;;  %p1734_p1 = scmp.eq.s32.totalorder %s1278_s27, 0 }
  0x34   : > { %s1732_s19 = scalar_select %p1431_p9, 1, 0 }
  0x35   : > { %s1441_s14 = scalar_select %p1733_p12, %s1262_s23, %s108_s20  }
  0x36   : > { %p117_p4 = por %p115_p11, %p1734_p1  ;;  %s257_s16 = sand.u32 1, %s1262_s23  }
  0x37   : > { %s1071_s17 = smul.u32 384, %s257_s16  ;;  %p1735_p5 = scmp.lt.s32.totalorder %s1278_s27, 2 }
  0x38   : > { %s1455_s7 = scalar_lea.hbm %s1718_s3, %s1072_s18  ;;  %s1459_s20 = scalar_lea.sflag [#allocation7], %s257_s16 }
  0x39   : > { %p1448_p6 = pnand %p1735_p5, %p117_p4  ;;  %s261_s13 = scalar_lea.vmem [#allocation6], %s1071_s17 }
  0x3a   : > { %s268_s8 = sshll.u32 %s261_s13, 4  ;;  %s1188_s27 = scalar_lea.hbm %s1455_s7, 6144  ;;  %s1457_s8 = int_to_ptr.vmem [resolvable:$true] %s268_s8 }
  0x3b   : > { %p1189_p13 = scmp.ne.s32.totalorder %s1455_s7, %s1188_s27  ;;  %p1190_p7 = pneg %p1448_p6 }
  0x3c   : > { %s1193_s18 = scalar_lea.hbm %s1718_s3, 12288  ;;  %p1194_p2 = scmp.lt.s32.totalorder %s1455_s7, %s1718_s3 }
  0x3d   : > { %p1191_p10 = pnand %p1190_p7, %p1189_p13  ;;  %p1195_p3 = scmp.lt.s32.totalorder %s1193_s18, %s1188_s27 }
  0x3f   : > { %p1192_p0 = pneg %p1191_p10  ;;  %p1196_p8 = por %p1195_p3, %p1194_p2 }
  0x41   : > { %p1197_p11 = pnand %p1196_p8, %p1192_p0 }
  0x43   : > { %1200 = shalt.err (!%p1197_p11)
}
  0x44   : > { %s1201_s16 = scalar_lea.vmem %s1457_s8, 6144  ;;  %s1283_s17 = smov [#allocation6]  }
  0x45   : > { %p1202_p12 = scmp.ne.s32.totalorder %s1457_s8, %s1201_s16  ;;  %s1206_s13 = sshll.u32 %s1283_s17, 4  ;;  %s1207_s13 = int_to_ptr.vmem [resolvable:$false] %s1206_s13 }
  0x46   : > { %s1208_s9 = scalar_lea.vmem %s1207_s13, 12288  ;;  %p1209_p5 = scmp.lt.s32.totalorder %s1457_s8, %s1207_s13 }
  0x47   : > { %p1204_p1 = pnand %p1202_p12, %p1190_p7  ;;  %p1210_p13 = scmp.lt.s32.totalorder %s1208_s9, %s1201_s16 }
  0x49   : > { %p1205_p4 = pneg %p1204_p1  ;;  %p1211_p10 = por %p1210_p13, %p1209_p5 }
  0x4b   : > { %p1212_p9 = pnand %p1211_p10, %p1205_p4 }
  0x4d   : > { %1215 = shalt.err (!%p1212_p9)
}
  0x4e   : > { %s1737_s10 = smov 24   ;;  %s1738_s27 = smov 384  }
  0x4f   : > { %1086 = dma.hbm_to_vmem [thread:$0]  (!%p1448_p6), %s1455_s7, 6144, %s1457_s8, %s1459_s20, %s1738_s27, %s1738_s27, %s1737_s10  }
  0x50   : > { %p1739_p7 = scmp.ne.s32.totalorder %s1732_s19, 0 }
  0x51   : > { %s295_s24 = sand.u32 (!%p1739_p7), 1, %s1270_s25   ;;  %p1740_p9 = scmp.ne.s32.totalorder (!%p1739_p7), %s1728_s12, 0 }
  0x52   : > { %293 = sbr.rel (%p1739_p7) target bundleno = 632 (0x278), region = 44  ;;  %s296_s30 = scalar_lea.sflag (!%p1739_p7), [#allocation5], %s295_s24 }
  0x53   : > { %s1073_s18 = smul.u32 (!%p1739_p7), 384, %s295_s24 }
  0x55   : > { %s1486_s16 = scalar_lea.vmem (!%p1739_p7), [#allocation4], %s1073_s18 }
  0x57   : > { %1245 = dma.done.wait (%p1740_p9), %s296_s30, 6144  }
  0x58   : > { %1247 = vsyncadd (%p1740_p9), %s296_s30, 4294961152  ;;  %s304_s21 = sand.u32 1, %s1258_s22   ;;  %p1741_p6 = scmp.ne.s32.totalorder %s1730_s15, 0 }
  0x59   : > { %s1074_s17 = smul.u32 384, %s304_s21  ;;  %s305_s7 = scalar_lea.sflag [#allocation7], %s304_s21 }
  0x5b   : > { %s1493_s8 = scalar_lea.vmem [#allocation6], %s1074_s17 }
  0x5c   : > { %1249 = dma.done.wait (%p1741_p6), %s305_s7, 6144  }
  0x5d   : > { %1251 = vsyncadd (%p1741_p6), %s305_s7, 4294961152  ;;  %p352_p0 = scmp.lt.s32.totalorder %s1355_s28, 1  ;;  %v1284_v0 = vmov 0.0   ;;  %vm1285_vm0 = vmmov 0   ;;  %v417_v1 = vld [vmem:[%s1493_s8 + $0x170] sm:$0xff]  ;;  %v418_v2 = vld [vmem:[%s1493_s8 + $0x178] sm:$0xff] }
  0x5e   : > { %999 = vmatprep.subr.mxu1 %v1284_v0  ;;  %1031 = vmatprep.mubr.msk.f32.mxu1 %vm1285_vm0, %v1284_v0  ;;  %v416_v3 = vld [vmem:[%s1493_s8 + $0x168] sm:$0xff]  ;;  %v414_v4 = vld [vmem:[%s1493_s8 + $0x158] sm:$0xff]  ;;  %v415_v5 = vld [vmem:[%s1493_s8 + $0x160] sm:$0xff]  ;;  %p957_p2 = scmp.ne.s32.totalorder %s1355_s28, 0 }
  0x5f   : > { %483 = vmatprep.mubr.f32.mxu0 %v1284_v0  ;;  %s1504_s12 = scalar_select %p352_p0, %s1355_s28, 1  ;;  %419 = vmatprep.subr.mxu0 %v417_v1  ;;  %v413_v6 = vld [vmem:[%s1493_s8 + $0x150] sm:$0xff]  ;;  %v411_v7 = vld [vmem:[%s1493_s8 + $0x140] sm:$0xff]  ;;  %v412_v8 = vld [vmem:[%s1493_s8 + $0x148] sm:$0xff] }
  0x60   : > { %1000 = vmatpush3.msra.mxu1 %v418_v2  ;;  %420 = vmatpush1.msra.mxu0 %v416_v3  ;;  %v410_v9 = vld [vmem:[%s1493_s8 + $0x138] sm:$0xff]  ;;  %v408_v10 = vld [vmem:[%s1493_s8 + $0x128] sm:$0xff]  ;;  %v409_v11 = vld [vmem:[%s1493_s8 + $0x130] sm:$0xff] }
  0x61   : > { %s1075_s15 = smul.u32 3, %s1504_s12  ;;  %s955_s19 = sshll.u32 %s1504_s12, 3  ;;  %1001 = vmatprep.subr.mxu1 %v1284_v0  ;;  %421 = vmatprep.subr.mxu0 %v414_v4  ;;  %v407_v12 = vld [vmem:[%s1493_s8 + $0x120] sm:$0xff]  ;;  %v405_v13 = vld [vmem:[%s1493_s8 + $0x110] sm:$0xff]  ;;  %v406_v14 = vld [vmem:[%s1493_s8 + $0x118] sm:$0xff] }
  0x62   : > { %s365_s9 = scalar_lea.vmem %s1720_s5, %s1504_s12  ;;  %s1522_s21 = scalar_lea.vmem %s1721_s6, %s955_s19  ;;  %1002 = vmatpush3.msra.mxu1 %v415_v5  ;;  %422 = vmatpush1.msra.mxu0 %v413_v6  ;;  %v404_v15 = vld [vmem:[%s1493_s8 + $0x108] sm:$0xff]  ;;  %v402_v16 = vld [vmem:[%s1493_s8 + $0xf8] sm:$0xff]  ;;  %v403_v17 = vld [vmem:[%s1493_s8 + $0x100] sm:$0xff] }
  0x63   : > { %s1515_s24 = scalar_lea.vmem %s1719_s4, %s1075_s15  ;;  %1003 = vmatprep.subr.mxu1 %v1284_v0  ;;  %423 = vmatprep.subr.mxu0 %v411_v7  ;;  %v401_v18 = vld [vmem:[%s1493_s8 + $0xf0] sm:$0xff]  ;;  %v399_v19 = vld [vmem:[%s1493_s8 + $0xe0] sm:$0xff]  ;;  %v400_v20 = vld [vmem:[%s1493_s8 + $0xe8] sm:$0xff]  ;;  %s355_s15 = scalar_lea.vmem %s1716_s1, %s955_s19 }
  0x64   : > { %1004 = vmatpush3.msra.mxu1 %v412_v8  ;;  %424 = vmatpush1.msra.mxu0 %v410_v9  ;;  %v398_v21 = vld [vmem:[%s1493_s8 + $0xd8] sm:$0xff]  ;;  %v396_v22 = vld [vmem:[%s1493_s8 + $0xc8] sm:$0xff]  ;;  %v397_v23 = vld [vmem:[%s1493_s8 + $0xd0] sm:$0xff] }
  0x65   : > { %1005 = vmatprep.subr.mxu1 %v1284_v0  ;;  %425 = vmatprep.subr.mxu0 %v408_v10  ;;  %v395_v24 = vld [vmem:[%s1493_s8 + $0xc0] sm:$0xff]  ;;  %v393_v25 = vld [vmem:[%s1493_s8 + $0xb0] sm:$0xff]  ;;  %v394_v26 = vld [vmem:[%s1493_s8 + $0xb8] sm:$0xff] }
  0x66   : > { %1006 = vmatpush3.msra.mxu1 %v409_v11  ;;  %426 = vmatpush1.msra.mxu0 %v407_v12  ;;  %v392_v27 = vld [vmem:[%s1493_s8 + $0xa8] sm:$0xff]  ;;  %v390_v28 = vld [vmem:[%s1493_s8 + $0x98] sm:$0xff]  ;;  %v391_v29 = vld [vmem:[%s1493_s8 + $0xa0] sm:$0xff] }
  0x67   : > { %1007 = vmatprep.subr.mxu1 %v1284_v0  ;;  %427 = vmatprep.subr.mxu0 %v405_v13  ;;  %v389_v30 = vld [vmem:[%s1493_s8 + $0x90] sm:$0xff]  ;;  %v387_v31 = vld [vmem:[%s1493_s8 + $0x80] sm:$0xff]  ;;  %v388_v32 = vld [vmem:[%s1493_s8 + $0x88] sm:$0xff] }
  0x68   : > { %1008 = vmatpush3.msra.mxu1 %v406_v14  ;;  %428 = vmatpush1.msra.mxu0 %v404_v15  ;;  %v386_v33 = vld [vmem:[%s1493_s8 + $0x78] sm:$0xff]  ;;  %v384_v34 = vld [vmem:[%s1493_s8 + $0x68] sm:$0xff]  ;;  %v385_v35 = vld [vmem:[%s1493_s8 + $0x70] sm:$0xff] }
  0x69   : > { %1009 = vmatprep.subr.mxu1 %v1284_v0  ;;  %429 = vmatprep.subr.mxu0 %v402_v16  ;;  %v383_v36 = vld [vmem:[%s1493_s8 + $0x60] sm:$0xff]  ;;  %v381_v37 = vld [vmem:[%s1493_s8 + $0x50] sm:$0xff]  ;;  %v382_v38 = vld [vmem:[%s1493_s8 + $0x58] sm:$0xff] }
  0x6a   : > { %1010 = vmatpush3.msra.mxu1 %v403_v17  ;;  %430 = vmatpush1.msra.mxu0 %v401_v18  ;;  %v380_v39 = vld [vmem:[%s1493_s8 + $0x48] sm:$0xff]  ;;  %v378_v40 = vld [vmem:[%s1493_s8 + $0x38] sm:$0xff]  ;;  %v379_v41 = vld [vmem:[%s1493_s8 + $0x40] sm:$0xff] }
  0x6b   : > { %1011 = vmatprep.subr.mxu1 %v1284_v0  ;;  %431 = vmatprep.subr.mxu0 %v399_v19  ;;  %v377_v42 = vld [vmem:[%s1493_s8 + $0x30] sm:$0xff]  ;;  %v375_v43 = vld [vmem:[%s1493_s8 + $0x20] sm:$0xff]  ;;  %v376_v44 = vld [vmem:[%s1493_s8 + $0x28] sm:$0xff] }
  0x6c   : > { %1012 = vmatpush3.msra.mxu1 %v400_v20  ;;  %432 = vmatpush1.msra.mxu0 %v398_v21  ;;  %v374_v45 = vld [vmem:[%s1493_s8 + $0x18] sm:$0xff]  ;;  %v372_v46 = vld [vmem:[%s1493_s8 + $0x8] sm:$0xff]  ;;  %v373_v47 = vld [vmem:[%s1493_s8 + $0x10] sm:$0xff] }
  0x6d   : > { %1013 = vmatprep.subr.mxu1 %v1284_v0  ;;  %433 = vmatprep.subr.mxu0 %v396_v22  ;;  %v371_v48 = vld [vmem:[%s1493_s8] sm:$0xff]  ;;  %v1591_v49 = vld [vmem:[%s355_s15] sm:$0xff] }
  0x6e   : > { %1014 = vmatpush3.msra.mxu1 %v397_v23  ;;  %434 = vmatpush1.msra.mxu0 %v395_v24 }
  0x6f   : > { %1015 = vmatprep.subr.mxu1 %v1284_v0  ;;  %435 = vmatprep.subr.mxu0 %v393_v25 }
  0x70   : > { %1016 = vmatpush3.msra.mxu1 %v394_v26  ;;  %436 = vmatpush1.msra.mxu0 %v392_v27 }
  0x71   : > { %1017 = vmatprep.subr.mxu1 %v1284_v0  ;;  %437 = vmatprep.subr.mxu0 %v390_v28 }
  0x72   : > { %1018 = vmatpush3.msra.mxu1 %v391_v29  ;;  %438 = vmatpush1.msra.mxu0 %v389_v30 }
  0x73   : > { %1019 = vmatprep.subr.mxu1 %v1284_v0  ;;  %439 = vmatprep.subr.mxu0 %v387_v31 }
  0x74   : > { %1020 = vmatpush3.msra.mxu1 %v388_v32  ;;  %440 = vmatpush1.msra.mxu0 %v386_v33 }
  0x75   : > { %1021 = vmatprep.subr.mxu1 %v1284_v0  ;;  %441 = vmatprep.subr.mxu0 %v384_v34 }
  0x76   : > { %1022 = vmatpush3.msra.mxu1 %v385_v35  ;;  %442 = vmatpush1.msra.mxu0 %v383_v36 }
  0x77   : > { %1023 = vmatprep.subr.mxu1 %v1284_v0  ;;  %443 = vmatprep.subr.mxu0 %v381_v37 }
  0x78   : > { %1024 = vmatpush3.msra.mxu1 %v382_v38  ;;  %444 = vmatpush1.msra.mxu0 %v380_v39 }
  0x79   : > { %1025 = vmatprep.subr.mxu1 %v1284_v0  ;;  %445 = vmatprep.subr.mxu0 %v378_v40 }
  0x7a   : > { %1026 = vmatpush3.msra.mxu1 %v379_v41  ;;  %446 = vmatpush1.msra.mxu0 %v377_v42 }
  0x7b   : > { %1027 = vmatprep.subr.mxu1 %v1284_v0  ;;  %447 = vmatprep.subr.mxu0 %v375_v43 }
  0x7c   : > { %1028 = vmatpush3.msra.mxu1 %v376_v44  ;;  %448 = vmatpush1.msra.mxu0 %v374_v45 }
  0x7d   : > { %1029 = vmatprep.subr.mxu1 %v1284_v0  ;;  %449 = vmatprep.subr.mxu0 %v372_v46 }
  0x7e   : > { %1030 = vmatpush3.msra.mxu1 %v373_v47  ;;  %450 = vmatpush1.msra.mxu0 %v371_v48 }
  0x7f   : > { %1032 = vmatmul.mubr.f32.vlgmr.msra.gmra.mxu1 %v1591_v49  ;;  %484 = vmatmul.mubr.f32.vlgmr.msra.gmra.mxu0 %v1591_v49 }
 0x13d   : > { %563 = sbr.rel (%p957_p2) target bundleno = 325 (0x145), region = 56 }
 0x13f   : > { %v1596_v50 = vpop.f32.mrf.mxu1  ;;  %v1598_v51 = vpop.f32.mrf.mxu0 }
 0x141   : > { %v1033_v52 = vpop.f32.mrf.mxu1  ;;  %v1600_v53 = vpop.f32.mrf.mxu0 }
 0x142   : > { %v564_v54 = vld [vmem:[%s1715_s0] sm:$0xff]  ;;  %v565_v55 = vld [vmem:[%s1715_s0 + $0x8] sm:$0xff]  ;;  %v566_v56 = vld [vmem:[%s1715_s0 + $0x10] sm:$0xff] }
 0x143   : > { %567 = vst [vmem:[#allocation3 + $0x10] sm:$0xff] %v564_v54  ;;  %568 = vst [vmem:[#allocation3] sm:$0xff] %v565_v55 }
 0x144   : > { %569 = vst [vmem:[#allocation3 + $0x8] sm:$0xff] %v566_v56 }
 0x145 PF: > { %p958_p3 = scmp.le.s32.totalorder %s1355_s28, 0 }
 0x147   : > { %573 = sbr.rel (%p958_p3) target bundleno = 562 (0x232), region = 60 }
 0x14c   : > { %v621_v57 = vld [vmem:[%s1486_s16 + $0x170] sm:$0xff]  ;;  %v620_v58 = vld [vmem:[%s1486_s16 + $0x168] sm:$0xff]  ;;  %v622_v59 = vld [vmem:[%s1486_s16 + $0x178] sm:$0xff]  ;;  %v1286_v60 = vmov 0.0   ;;  %vm1287_vm1 = vmmov 0  }
 0x14d   : > { %623 = vmatprep.subr.mxu0 %v621_v57  ;;  %1034 = vmatprep.subr.mxu1 %v1286_v60  ;;  %v618_v61 = vld [vmem:[%s1486_s16 + $0x158] sm:$0xff]  ;;  %v617_v62 = vld [vmem:[%s1486_s16 + $0x150] sm:$0xff]  ;;  %v619_v63 = vld [vmem:[%s1486_s16 + $0x160] sm:$0xff] }
 0x14e   : > { %624 = vmatpush1.msra.mxu0 %v620_v58  ;;  %1035 = vmatpush3.msra.mxu1 %v622_v59  ;;  %v615_v0 = vld [vmem:[%s1486_s16 + $0x140] sm:$0xff]  ;;  %v614_v1 = vld [vmem:[%s1486_s16 + $0x138] sm:$0xff]  ;;  %v616_v2 = vld [vmem:[%s1486_s16 + $0x148] sm:$0xff] }
 0x14f   : > { %625 = vmatprep.subr.mxu0 %v618_v61  ;;  %1036 = vmatprep.subr.mxu1 %v1286_v60  ;;  %v612_v3 = vld [vmem:[%s1486_s16 + $0x128] sm:$0xff]  ;;  %v611_v4 = vld [vmem:[%s1486_s16 + $0x120] sm:$0xff]  ;;  %v613_v5 = vld [vmem:[%s1486_s16 + $0x130] sm:$0xff] }
 0x150   : > { %626 = vmatpush1.msra.mxu0 %v617_v62  ;;  %1037 = vmatpush3.msra.mxu1 %v619_v63  ;;  %v609_v6 = vld [vmem:[%s1486_s16 + $0x110] sm:$0xff]  ;;  %v608_v7 = vld [vmem:[%s1486_s16 + $0x108] sm:$0xff]  ;;  %v610_v8 = vld [vmem:[%s1486_s16 + $0x118] sm:$0xff] }
 0x151   : > { %627 = vmatprep.subr.mxu0 %v615_v0  ;;  %1038 = vmatprep.subr.mxu1 %v1286_v60  ;;  %v606_v9 = vld [vmem:[%s1486_s16 + $0xf8] sm:$0xff]  ;;  %v605_v10 = vld [vmem:[%s1486_s16 + $0xf0] sm:$0xff]  ;;  %v607_v11 = vld [vmem:[%s1486_s16 + $0x100] sm:$0xff] }
 0x152   : > { %628 = vmatpush1.msra.mxu0 %v614_v1  ;;  %1039 = vmatpush3.msra.mxu1 %v616_v2  ;;  %v603_v12 = vld [vmem:[%s1486_s16 + $0xe0] sm:$0xff]  ;;  %v602_v13 = vld [vmem:[%s1486_s16 + $0xd8] sm:$0xff]  ;;  %v604_v14 = vld [vmem:[%s1486_s16 + $0xe8] sm:$0xff] }
 0x153   : > { %629 = vmatprep.subr.mxu0 %v612_v3  ;;  %1040 = vmatprep.subr.mxu1 %v1286_v60  ;;  %v600_v15 = vld [vmem:[%s1486_s16 + $0xc8] sm:$0xff]  ;;  %v599_v16 = vld [vmem:[%s1486_s16 + $0xc0] sm:$0xff]  ;;  %v601_v17 = vld [vmem:[%s1486_s16 + $0xd0] sm:$0xff] }
 0x154   : > { %630 = vmatpush1.msra.mxu0 %v611_v4  ;;  %1041 = vmatpush3.msra.mxu1 %v613_v5  ;;  %v597_v18 = vld [vmem:[%s1486_s16 + $0xb0] sm:$0xff]  ;;  %v596_v19 = vld [vmem:[%s1486_s16 + $0xa8] sm:$0xff]  ;;  %v598_v20 = vld [vmem:[%s1486_s16 + $0xb8] sm:$0xff] }
 0x155   : > { %631 = vmatprep.subr.mxu0 %v609_v6  ;;  %1042 = vmatprep.subr.mxu1 %v1286_v60  ;;  %v594_v21 = vld [vmem:[%s1486_s16 + $0x98] sm:$0xff]  ;;  %v593_v22 = vld [vmem:[%s1486_s16 + $0x90] sm:$0xff]  ;;  %v595_v23 = vld [vmem:[%s1486_s16 + $0xa0] sm:$0xff] }
 0x156   : > { %632 = vmatpush1.msra.mxu0 %v608_v7  ;;  %1043 = vmatpush3.msra.mxu1 %v610_v8  ;;  %v591_v24 = vld [vmem:[%s1486_s16 + $0x80] sm:$0xff]  ;;  %v590_v25 = vld [vmem:[%s1486_s16 + $0x78] sm:$0xff]  ;;  %v592_v26 = vld [vmem:[%s1486_s16 + $0x88] sm:$0xff] }
 0x157   : > { %633 = vmatprep.subr.mxu0 %v606_v9  ;;  %1044 = vmatprep.subr.mxu1 %v1286_v60  ;;  %v588_v27 = vld [vmem:[%s1486_s16 + $0x68] sm:$0xff]  ;;  %v587_v28 = vld [vmem:[%s1486_s16 + $0x60] sm:$0xff]  ;;  %v589_v29 = vld [vmem:[%s1486_s16 + $0x70] sm:$0xff] }
 0x158   : > { %634 = vmatpush1.msra.mxu0 %v605_v10  ;;  %1045 = vmatpush3.msra.mxu1 %v607_v11  ;;  %v585_v30 = vld [vmem:[%s1486_s16 + $0x50] sm:$0xff]  ;;  %v584_v31 = vld [vmem:[%s1486_s16 + $0x48] sm:$0xff]  ;;  %v586_v32 = vld [vmem:[%s1486_s16 + $0x58] sm:$0xff] }
 0x159   : > { %635 = vmatprep.subr.mxu0 %v603_v12  ;;  %1046 = vmatprep.subr.mxu1 %v1286_v60  ;;  %v582_v33 = vld [vmem:[%s1486_s16 + $0x38] sm:$0xff]  ;;  %v581_v34 = vld [vmem:[%s1486_s16 + $0x30] sm:$0xff]  ;;  %v583_v35 = vld [vmem:[%s1486_s16 + $0x40] sm:$0xff] }
 0x15a   : > { %636 = vmatpush1.msra.mxu0 %v602_v13  ;;  %1047 = vmatpush3.msra.mxu1 %v604_v14  ;;  %v579_v36 = vld [vmem:[%s1486_s16 + $0x20] sm:$0xff]  ;;  %v578_v37 = vld [vmem:[%s1486_s16 + $0x18] sm:$0xff]  ;;  %v580_v38 = vld [vmem:[%s1486_s16 + $0x28] sm:$0xff] }
 0x15b   : > { %637 = vmatprep.subr.mxu0 %v600_v15  ;;  %1048 = vmatprep.subr.mxu1 %v1286_v60  ;;  %v576_v39 = vld [vmem:[%s1486_s16 + $0x8] sm:$0xff]  ;;  %v575_v40 = vld [vmem:[%s1486_s16] sm:$0xff]  ;;  %v577_v41 = vld [vmem:[%s1486_s16 + $0x10] sm:$0xff] }
 0x15c   : > { %638 = vmatpush1.msra.mxu0 %v599_v16  ;;  %1049 = vmatpush3.msra.mxu1 %v601_v17  ;;  %v574_v42 = vld [vmem:[#allocation2] sm:$0xff] }
 0x15d   : > { %639 = vmatprep.subr.mxu0 %v597_v18  ;;  %1050 = vmatprep.subr.mxu1 %v1286_v60 }
 0x15e   : > { %640 = vmatpush1.msra.mxu0 %v596_v19  ;;  %1051 = vmatpush3.msra.mxu1 %v598_v20 }
 0x15f   : > { %641 = vmatprep.subr.mxu0 %v594_v21  ;;  %1052 = vmatprep.subr.mxu1 %v1286_v60 }
 0x160   : > { %642 = vmatpush1.msra.mxu0 %v593_v22  ;;  %1053 = vmatpush3.msra.mxu1 %v595_v23 }
 0x161   : > { %643 = vmatprep.subr.mxu0 %v591_v24  ;;  %1054 = vmatprep.subr.mxu1 %v1286_v60 }
 0x162   : > { %644 = vmatpush1.msra.mxu0 %v590_v25  ;;  %1055 = vmatpush3.msra.mxu1 %v592_v26 }
 0x163   : > { %645 = vmatprep.subr.mxu0 %v588_v27  ;;  %1056 = vmatprep.subr.mxu1 %v1286_v60 }
 0x164   : > { %646 = vmatpush1.msra.mxu0 %v587_v28  ;;  %1057 = vmatpush3.msra.mxu1 %v589_v29 }
 0x165   : > { %647 = vmatprep.subr.mxu0 %v585_v30  ;;  %1058 = vmatprep.subr.mxu1 %v1286_v60 }
 0x166   : > { %648 = vmatpush1.msra.mxu0 %v584_v31  ;;  %1059 = vmatpush3.msra.mxu1 %v586_v32 }
 0x167   : > { %649 = vmatprep.subr.mxu0 %v582_v33  ;;  %1060 = vmatprep.subr.mxu1 %v1286_v60 }
 0x168   : > { %650 = vmatpush1.msra.mxu0 %v581_v34  ;;  %1061 = vmatpush3.msra.mxu1 %v583_v35 }
 0x169   : > { %651 = vmatprep.subr.mxu0 %v579_v36  ;;  %1062 = vmatprep.subr.mxu1 %v1286_v60 }
 0x16a   : > { %652 = vmatpush1.msra.mxu0 %v578_v37  ;;  %1063 = vmatpush3.msra.mxu1 %v580_v38 }
 0x16b   : > { %653 = vmatprep.subr.mxu0 %v576_v39  ;;  %1064 = vmatprep.subr.mxu1 %v1286_v60 }
 0x16c   : > { %654 = vmatpush1.msra.mxu0 %v575_v40  ;;  %687 = vmatprep.mubr.f32.mxu0 %v1286_v60 }
 0x16d   : > { %1065 = vmatpush3.msra.mxu1 %v577_v41  ;;  %1066 = vmatprep.mubr.msk.f32.mxu1 %vm1287_vm1, %v1286_v60 }
 0x16e   : > { %688 = vmatmul.mubr.f32.vlgmr.msra.gmra.mxu0 %v574_v42  ;;  %1067 = vmatmul.mubr.f32.vlgmr.msra.gmra.mxu1 %v574_v42 }
 0x22e   : > { %v689_v43 = vpop.f32.mrf.mxu0  ;;  %v760_v44 = vpop.f32.mrf.mxu1 }
 0x22f   : > { %764 = vst [vmem:[#allocation3 + $0x10] sm:$0xff] %v689_v43  ;;  %766 = vst [vmem:[#allocation3 + $0x8] sm:$0xff] %v760_v44 }
 0x230   : > { %v691_v45 = vpop.f32.mrf.mxu0  ;;  %v1068_v46 = vpop.f32.mrf.mxu1 }
 0x231   : > { %765 = vst [vmem:[#allocation3] sm:$0xff] %v691_v45 }
 0x232 PF: > { %v772_v47 = vlaneseq  ;;  %s819_s16 = sadd.s32 1, %s1355_s28  ;;  %v770_v52 = vld [vmem:[%s1515_s24] sm:$0x7] }
 0x233   : > { %v961_v5 = vld [vmem:[%s365_s9] ss:$0 sm:$0xff]  ;;  %p962_p8 = scmp.ge.s32.totalorder %s819_s16, 2 }
 0x234   : > { %v773_v48 = vshrl.u32 %v772_v47, 7  ;;  %v811_v8 = vadd.f32 %v961_v5, %v1596_v50 }
 0x236   : > { %v774_v54 = vsub.s32 0, %v773_v48  ;;  %v767_v55 = vld [vmem:[#allocation3 + $0x10] sm:$0xff]  ;;  %v778_v57 = vsub.s32 1, %v773_v48  ;;  %v782_v4 = vsub.s32 2, %v773_v48 }
 0x238   : > { %v775_v56 = vrot.slane %v770_v52, %v774_v54  ;;  %v779_v60 = vrot.slane %v770_v52, %v778_v57  ;;  %v768_v61 = vld [vmem:[#allocation3] sm:$0xff]  ;;  %v783_v6 = vrot.slane %v770_v52, %v782_v4 }
 0x23a   : > { %v787_v58 = vadd.f32 %v775_v56, %v767_v55  ;;  %v788_v63 = vadd.f32 %v779_v60, %v768_v61 }
 0x23c   : > { %v790_v59 = vadd.f32 %v787_v58, %v1598_v51  ;;  %v797_v0 = vadd.f32 %v788_v63, %v1600_v53  ;;  %v769_v51 = vld [vmem:[#allocation3 + $0x8] sm:$0xff] }
 0x23d   : > { %v789_v9 = vadd.f32 %v783_v6, %v769_v51 }
 0x23e   : > { %v959_v62 = vmul.f32 -1.442695, %v790_v59  ;;  %v960_v1 = vmul.f32 -1.442695, %v797_v0 }
 0x240   : > { %1150 = vpow2.f32 %v959_v62 }
 0x241   : > { %1152 = vpow2.f32 %v960_v1 }
 0x24d   : > { %v1151_v2 = vpop.eup %1150 }
 0x24e   : > { %v794_v3 = vadd.f32 1.0, %v1151_v2  ;;  %v1153_v7 = vpop.eup %1152 }
 0x24f   : > { %v801_v53 = vadd.f32 1.0, %v1153_v7 }
 0x250   : > { %1154 = vrcp.f32 %v794_v3 }
 0x251   : > { %1156 = vrcp.f32 %v801_v53 }
 0x25d   : > { %v1155_v10 = vpop.eup %1154 }
 0x25e   : > { %v812_v11 = vmul.f32 %v1155_v10, %v811_v8  ;;  %v1157_v13 = vpop.eup %1156 }
 0x260   : > { %v813_v12 = vadd.f32 %v812_v11, %v789_v9 }
 0x262   : > { %1158 = vtanh.f32 %v813_v12 }
 0x26f   : > { %v1159_v14 = vpop.eup %1158 }
 0x270   : > { %v815_v15 = vsub.f32 %v1591_v49, %v1159_v14 }
 0x272   : > { %v816_v16 = vmul.f32 %v1157_v13, %v815_v15  ;;  %823 = sbr.rel (%p962_p8) target bundleno = 632 (0x278), region = 64 }
 0x274   : > { %v817_v17 = vadd.f32 %v1159_v14, %v816_v16 }
 0x276   : > { %818 = vst [vmem:[%s1522_s21] sm:$0xff] %v817_v17 }
 0x277   : > { %824 = vst [vmem:[#allocation2] sm:$0xff] %v817_v17 }
 0x278 PF: > { %p19_p11 = scmp.ge.s32.totalorder %s1358_s29, 4   ;;  %s1742_s21 = smov %s1258_s22 }
 0x279   : > { %s1743_s22 = smov %s1262_s23  ;;  %s1744_s23 = smov %s1441_s14 }
 0x27a   : > { %s1745_s24 = smov %s1270_s25  ;;  %s1746_s25 = smov %s1274_s26 }
 0x27b   : > { %s1747_s26 = smov %s1374_s11  ;;  %s1748_s27 = smov %s1358_s29 }
 0x27c   :  { %21 = sbr.rel (!%p19_p11) target bundleno = 7 (0x7), region = 118 }
 0x281   :  { %844 = vsyncpa [#allocation5], 1 }
 0x282   :  { %846 = vsyncpa [#allocation5 + $0x1], 1 }
 0x283   :  { %847 = vsyncpa [#allocation7], 1 }
 0x284   :  { %849 = vsyncpa [#allocation7 + $0x1], 1 }

</bundles_post_ra>
